<compile_context>
chip_gen: v6e
topology: v6e:2x2x1
jax: 0.10.0
libtpu: 0.0.40
codegen_flags: <defaults>
</compile_context>

<pallas_src>
import functools

import jax
import jax.numpy as jnp
from jax.experimental import pallas as pl
from jax.experimental.pallas import tpu as pltpu

# Small test config consistent with the module (original: b=128, c=3, h=w=32, p=4, d=128)
B = 2            # batch
C = 3            # channels
H = 16           # height
W_IMG = 16       # width
P = 4            # patch size
D = 128          # hidden dim
NTOK = (H // P) * (W_IMG // P)   # 16 patch tokens
K = P * P * C                    # 48 patch features
SEQ = NTOK + 1                   # 17 tokens incl. class token

# VMEM policy: limit <= ~40 MiB is safe on v7x (64 MiB physical) and well above
# v5e's 16 MiB default scoped VMEM; tile-budget leaves headroom under the limit.
_VMEM_LIMIT_BYTES = 40 * 1024 * 1024
_VMEM_TILE_BUDGET = 32 * 1024 * 1024


def _pos_emb_kernel(patch_ref, w_ref, pos_tok_ref, cls_ref, out_ref, *, bt, n_tok, d):
    # patch_ref:   (bt*n_tok, K)  flattened patch tokens of bt batch elements
    # w_ref:       (K, D)         projection weight (torch weight.T)
    # pos_tok_ref: (1, n_tok, D)  pos rows 1: with projection bias folded in (f32)
    # cls_ref:     (bt, 1, D)     per-batch class token with pos row 0 folded in (f32)
    # out_ref:     (bt, SEQ, D)
    proj = jnp.dot(patch_ref[...], w_ref[...],
                   preferred_element_type=jnp.float32)        # one MXU pass, M = bt*n_tok
    proj = proj.reshape(bt, n_tok, d) + pos_tok_ref[...]      # f32 epilogue add
    # Two direct slice stores (no in-kernel concatenate). The [:, 1:, :] store is a
    # masked/sublane-offset write; mostly hidden while HBM-bound.
    # TODO(synk): a SEQ-padded / split-output layout would make it a full unmasked tile write.
    out_ref[:, 1:, :] = proj.astype(out_ref.dtype)
    out_ref[:, 0:1, :] = cls_ref[...].astype(out_ref.dtype)


def prepare_params(w_proj, b_proj, x_class, pos_emb, compute_dtype=jnp.float32):
    """One-time parameter transform (call once, not per forward step).

    compute_dtype controls only the matmul inputs (weight / patch tokens);
    the pos/class epilogue terms stay f32 on every TPU generation.
    """
    d = w_proj.shape[-1]
    pos_tok = (pos_emb[:, 1:, :] + b_proj.reshape(1, 1, d)).astype(jnp.float32)
    cls_plus = (x_class + pos_emb[:, 0:1, :]).astype(jnp.float32)
    w = w_proj.astype(compute_dtype)
    return w, pos_tok, cls_plus


def _choose_bt(b, n_tok, seq, k, d, in_bytes, out_bytes, vmem_budget=_VMEM_TILE_BUDGET):
    """Largest batch tile that fits the VMEM tile budget, keeping a multi-step grid."""
    per_bt = (2 * n_tok * k * in_bytes      # double-buffered patch-token tile
              + 2 * seq * d * out_bytes     # double-buffered output tile
              + n_tok * d * 4               # f32 matmul result / epilogue intermediate
              + 2 * d * 4)                  # double-buffered class-token tile
    bt_cap = max(1, int(vmem_budget) // int(per_bt))
    # Keep >=4 grid steps (>=2 for tiny batches): both v7x TensorCores get work,
    # and double-buffering still has steps to overlap. Costs nothing on v5e/v6e.
    steps_target = 4 if b >= 4 else 2
    bt = max(1, min(bt_cap, pl.cdiv(b, steps_target)))
    return int(bt)


def positional_embedding(x, w, pos_tok, cls_plus, *, patch=P, out_dtype=None):
    b, c, h, width = x.shape
    hp, wp = h // patch, width // patch
    n_tok = hp * wp
    k = patch * patch * c
    d = w.shape[-1]
    seq = n_tok + 1
    out_dtype = x.dtype if out_dtype is None else out_dtype

    # ---- patchify: reshape/transpose glue (mirrors torch view/transpose chain) ----
    # Kept wrapper-side (Mosaic does not lower this 6-D permute well in-kernel);
    # allow_input_fusion below lets XLA fuse it into the kernel's input DMA so it
    # does not remain a separate HBM round-trip in front of the pallas_call.
    patched = x.reshape(b, c, hp, patch, wp, patch)
    patched = patched.transpose(0, 2, 4, 1, 3, 5)                 # (b, hp, wp, c, p, p)
    patched = patched.reshape(b * n_tok, k).astype(w.dtype)       # rows feed the MXU M dim

    in_bytes = jnp.dtype(w.dtype).itemsize
    out_bytes = jnp.dtype(out_dtype).itemsize
    bt = _choose_bt(b, n_tok, seq, k, d, in_bytes, out_bytes)

    # cdiv grid + zero-padded batch tail: works for any b (no divisor search).
    num_steps = int(pl.cdiv(b, bt))
    b_pad = num_steps * bt
    cls_p = cls_plus
    if b_pad != b:
        patched = jnp.pad(patched, ((0, (b_pad - b) * n_tok), (0, 0)))
        cls_p = jnp.pad(cls_plus, ((0, b_pad - b), (0, 0), (0, 0)))

    kernel = functools.partial(_pos_emb_kernel, bt=bt, n_tok=n_tok, d=d)

    out = pl.pallas_call(
        kernel,
        out_shape=jax.ShapeDtypeStruct((b_pad, seq, d), out_dtype),
        grid_spec=pltpu.PrefetchScalarGridSpec(
            num_scalar_prefetch=0,
            grid=(num_steps,),
            in_specs=[
                pl.BlockSpec((bt * n_tok, k), lambda i: (i, 0)),
                pl.BlockSpec((k, d), lambda i: (0, 0)),
                pl.BlockSpec((1, n_tok, d), lambda i: (0, 0, 0)),
                pl.BlockSpec((bt, 1, d), lambda i: (i, 0, 0)),
            ],
            out_specs=pl.BlockSpec((bt, seq, d), lambda i: (i, 0, 0)),
        ),
        compiler_params=pltpu.CompilerParams(
            dimension_semantics=("parallel",),
            vmem_limit_bytes=_VMEM_LIMIT_BYTES,
            # Let XLA fuse the patchify transpose into the patched-operand DMA.
            allow_input_fusion=[True, False, False, False],
        ),
    )(patched, w, pos_tok, cls_p)

    if b_pad != b:
        out = out[:b]
    # TODO(synk): nn.Dropout(0.1) training-mode masking not implemented (identity at inference).
    return out


def reference(x, w_proj, b_proj, x_class, pos_emb, patch=P):
    b, c, h, width = x.shape
    n_tok = (h // patch) * (width // patch)
    k = patch * patch * c
    patched = x.reshape(b, c, h // patch, patch, width // patch, patch)
    patched = patched.transpose(0, 2, 4, 1, 3, 5).reshape(b, n_tok, k)
    proj = patched @ w_proj + b_proj
    with_cls = jnp.concatenate([x_class, proj], axis=1)
    return with_cls + pos_emb


if __name__ == "__main__":
    key = jax.random.PRNGKey(0)
    k_x, k_w, k_b, k_cls, k_pos = jax.random.split(key, 5)

    x = jax.random.normal(k_x, (B, C, H, W_IMG), dtype=jnp.float32)
    # parameters (deterministic synthetic init; w_proj stored as [K, D] i.e. torch weight.T)
    w_proj = jax.random.normal(k_w, (K, D), dtype=jnp.float32) * 0.02
    b_proj = jax.random.normal(k_b, (1, D), dtype=jnp.float32) * 0.02
    x_class = jax.random.normal(k_cls, (B, 1, D), dtype=jnp.float32)
    pos_emb = jax.random.normal(k_pos, (1, SEQ, D), dtype=jnp.float32)

    ref = reference(x, w_proj, b_proj, x_class, pos_emb)

    # ---- exact f32 path (default, safe on every generation) ----
    w_f32, pos_tok, cls_plus = prepare_params(w_proj, b_proj, x_class, pos_emb)
    out = positional_embedding(x, w_f32, pos_tok, cls_plus)
    out = jax.block_until_ready(out)
    assert out.shape == (B, SEQ, D), out.shape
    assert jnp.allclose(out, ref, atol=1e-5, rtol=1e-5), "f32 mismatch vs reference"

    # ---- bf16 matmul-input + bf16 output path (the v6e/v7x byte-saving path) ----
    w_bf16, pos_tok_b, cls_plus_b = prepare_params(
        w_proj, b_proj, x_class, pos_emb, compute_dtype=jnp.bfloat16)
    out_bf16 = positional_embedding(x, w_bf16, pos_tok_b, cls_plus_b,
                                    out_dtype=jnp.bfloat16)
    out_bf16 = jax.block_until_ready(out_bf16)
    assert out_bf16.shape == (B, SEQ, D), out_bf16.shape
    assert jnp.allclose(out_bf16.astype(jnp.float32), ref, atol=5e-2, rtol=5e-2), \
        "bf16 mismatch vs reference"

    print("KERNEL_OK")
</pallas_src>

<mosaic_0001>
module attributes {stable_mosaic.version = 11 : i64} {
  func.func @_pos_emb_kernel(%arg0: i32, %arg1: memref<16x48xf32, #tpu.memory_space<vmem>>, %arg2: memref<48x128xf32, #tpu.memory_space<vmem>>, %arg3: memref<1x16x128xf32, #tpu.memory_space<vmem>>, %arg4: memref<1x1x128xf32, #tpu.memory_space<vmem>>, %arg5: memref<1x17x128xf32, #tpu.memory_space<vmem>>) attributes {dimension_semantics = [#tpu.dimension_semantics<parallel>], iteration_bounds = array<i64: 2>, scalar_prefetch = 0 : i64, scratch_operands = 0 : i64, tpu.core_type = #tpu.core_type<tc>, window_params = [{transform_indices = @transform_0, window_bounds = array<i64: 16, 48>}, {pipeline_mode = #tpu.pipeline_mode<synchronous>, transform_indices = @transform_1, window_bounds = array<i64: 48, 128>}, {pipeline_mode = #tpu.pipeline_mode<synchronous>, transform_indices = @transform_2, window_bounds = array<i64: 1, 16, 128>}, {transform_indices = @transform_3, window_bounds = array<i64: 1, 1, 128>}, {transform_indices = @transform_4, window_bounds = array<i64: 1, 17, 128>}]} {
    %c0 = arith.constant 0 : index
    %c0_0 = arith.constant 0 : index
    %0 = vector.load %arg1[%c0, %c0_0] : memref<16x48xf32, #tpu.memory_space<vmem>>, vector<16x48xf32>
    %c0_1 = arith.constant 0 : index
    %c0_2 = arith.constant 0 : index
    %1 = vector.load %arg2[%c0_1, %c0_2] : memref<48x128xf32, #tpu.memory_space<vmem>>, vector<48x128xf32>
    %cst = arith.constant dense<0.000000e+00> : vector<16x128xf32>
    %2 = tpu.matmul %0, %1, %cst {dimension_numbers = #tpu.dot_dimension_numbers<[1], [0], [0], [1], [0, 0, 1, 1], [], []>} : vector<16x48xf32>, vector<48x128xf32>, vector<16x128xf32> -> vector<16x128xf32>
    %3 = vector.shape_cast %2 : vector<16x128xf32> to vector<1x16x128xf32>
    %c0_3 = arith.constant 0 : index
    %c0_4 = arith.constant 0 : index
    %c0_5 = arith.constant 0 : index
    %4 = vector.load %arg3[%c0_3, %c0_4, %c0_5] : memref<1x16x128xf32, #tpu.memory_space<vmem>>, vector<1x16x128xf32>
    %5 = arith.addf %3, %4 : vector<1x16x128xf32>
    %c0_6 = arith.constant 0 : index
    %c1 = arith.constant 1 : index
    %c0_7 = arith.constant 0 : index
    %6 = vector.load %arg5[%c0_6, %c1, %c0_7] : memref<1x17x128xf32, #tpu.memory_space<vmem>>, vector<1x16x128xf32>
    tpu.vector_store %arg5[%c0_6, %c1, %c0_7], %5 {strides = array<i32>} : memref<1x17x128xf32, #tpu.memory_space<vmem>>, vector<1x16x128xf32>,
    %c0_8 = arith.constant 0 : index
    %c0_9 = arith.constant 0 : index
    %c0_10 = arith.constant 0 : index
    %7 = vector.load %arg4[%c0_8, %c0_9, %c0_10] : memref<1x1x128xf32, #tpu.memory_space<vmem>>, vector<1x1x128xf32>
    %c0_11 = arith.constant 0 : index
    %c0_12 = arith.constant 0 : index
    %c0_13 = arith.constant 0 : index
    %8 = vector.load %arg5[%c0_11, %c0_12, %c0_13] : memref<1x17x128xf32, #tpu.memory_space<vmem>>, vector<1x1x128xf32>
    tpu.vector_store %arg5[%c0_11, %c0_12, %c0_13], %7 {strides = array<i32>} : memref<1x17x128xf32, #tpu.memory_space<vmem>>, vector<1x1x128xf32>,
    return
  }
  func.func @transform_0(%arg0: i32) -> (i32, i32) {
    %c0_i32 = arith.constant 0 : i32
    %c0_i32_0 = arith.constant 0 : i32
    return %arg0, %c0_i32 : i32, i32
  }
  func.func @transform_1(%arg0: i32) -> (i32, i32) {
    %c0_i32 = arith.constant 0 : i32
    %c0_i32_0 = arith.constant 0 : i32
    %c0_i32_1 = arith.constant 0 : i32
    return %c0_i32, %c0_i32_0 : i32, i32
  }
  func.func @transform_2(%arg0: i32) -> (i32, i32, i32) {
    %c0_i32 = arith.constant 0 : i32
    %c0_i32_0 = arith.constant 0 : i32
    %c0_i32_1 = arith.constant 0 : i32
    %c0_i32_2 = arith.constant 0 : i32
    return %c0_i32, %c0_i32_0, %c0_i32_1 : i32, i32, i32
  }
  func.func @transform_3(%arg0: i32) -> (i32, i32, i32) {
    %c0_i32 = arith.constant 0 : i32
    %c0_i32_0 = arith.constant 0 : i32
    %c0_i32_1 = arith.constant 0 : i32
    return %arg0, %c0_i32, %c0_i32_0 : i32, i32, i32
  }
  func.func @transform_4(%arg0: i32) -> (i32, i32, i32) {
    %c0_i32 = arith.constant 0 : i32
    %c0_i32_0 = arith.constant 0 : i32
    %c0_i32_1 = arith.constant 0 : i32
    return %arg0, %c0_i32, %c0_i32_0 : i32, i32, i32
  }
}

</mosaic_0001>

<bundles_post_ra>
// kernel: tpu_custom_call.1
= control target key start
LH: loop header
LB: loop body
LE: loop exit
PB: predicated region body
PF: predicated region fallthrough
CT: control target
= control target key end

     0   :  { %9 = vsyncpa [#allocation3], 0  ;;  %s860_s0 = inlined_call_operand.hbm [shape: f32[32,48], index: 0, kind: input, shape index: {}]   ;;  %s861_s1 = inlined_call_operand.hbm [shape: f32[48,128], index: 1, kind: input, shape index: {}]   ;;  %s862_s2 = inlined_call_operand.hbm [shape: f32[1,16,128], index: 2, kind: input, shape index: {}]   ;;  %s863_s3 = inlined_call_operand.vmem [shape: f32[2,1,128], index: 3, kind: input, shape index: {}]   ;;  %s864_s4 = inlined_call_operand.vmem [shape: f32[2,17,128], index: 4, kind: output, shape index: {}]  }
   0x1   :  { %11 = vsyncpa [#allocation3 + $0x1], 0 }
   0x2   :  { %12 = vsyncpa [#allocation5], 0  ;;  %s709_s15 = smov 0   ;;  %s711_s16 = smov 0  }
   0x3   :  { %s713_s17 = smov 0   ;;  %s715_s18 = smov 0  }
   0x4 LB: > { %s728_s19 = sadd.s32 4294967295, %s677_s18   ;;  %p38_p0 = scmp.ne.s32.totalorder %s669_s16, %s665_s15  ;;  %s677_s18 = sphi %s715_s18, %s879_s18   ;;  %s673_s17 = sphi %s713_s17, %s878_s17   ;;  %s669_s16 = sphi %s711_s16, %s877_s16   ;;  %s665_s15 = sphi %s709_s15, %s876_s15  }
   0x5   : > { %p865_p1 = scmp.eq.s32.totalorder %s728_s19, 0  ;;  %p456_p2 = scmp.ge.s32.totalorder %s677_s18, 1 }
   0x6   : > { %p143_p3 = scmp.lt.s32.totalorder %s677_s18, 3  ;;  %s679_s22 = smov [#allocation4]  }
   0x7   : > { %p736_p4 = por %p865_p1, %p38_p0  ;;  %s155_s23 = sshll.u32 %s679_s22, 4  ;;  %s156_s23 = int_to_ptr.vmem [resolvable:$true] %s155_s23 }
   0x8   : > { %p740_p5 = pnand %p456_p2, %p143_p3  ;;  %s680_s25 = smov [#allocation6]  }
   0x9   : > { %s868_s20 = scalar_select %p736_p4, 1, 0 }
   0xa   : > { %s869_s21 = scalar_select %p740_p5, 1, 0 }
   0xb   : > { %p507_p6 = pneg %p740_p5  ;;  %s168_s26 = sshll.u32 %s680_s25, 4  ;;  %s169_s26 = int_to_ptr.vmem [resolvable:$true] %s168_s26 }
   0xc   : > { %s570_s27 = scalar_lea.vmem %s156_s23, 768  ;;  %p578_p12 = scmp.lt.s32.totalorder %s156_s23, %s156_s23 }
   0xd   : > { %p748_p7 = pnand %p507_p6, %p865_p1  ;;  %p571_p9 = scmp.ne.s32.totalorder %s156_s23, %s570_s27 }
   0xe   : > { %p579_p13 = scmp.lt.s32.totalorder %s570_s27, %s570_s27 }
   0xf   : > { %p561_p8 = pneg %p748_p7 }
  0x10   : > { %p580_p0 = por %p579_p13, %p578_p12 }
  0x11   : > { %p573_p10 = pnand %p571_p9, %p561_p8 }
  0x13   : > { %p574_p11 = pneg %p573_p10 }
  0x15   : > { %p581_p2 = pnand %p580_p0, %p574_p11 }
  0x17   : > { %584 = shalt.err (!%p581_p2)
}
  0x18   : > { %s681_s28 = smov 128   ;;  %s682_s29 = smov 8  }
  0x19   : > { %510 = dma.hbm_to_vmem [thread:$0]  (!%p748_p7), %s861_s1, 768, %s156_s23, [#allocation5], %s681_s28, %s681_s28, %s682_s29  }
  0x1a   : > { %s596_s6 = scalar_lea.vmem %s169_s26, 256  ;;  %p604_p10 = scmp.lt.s32.totalorder %s169_s26, %s169_s26 }
  0x1b   : > { %p597_p3 = scmp.ne.s32.totalorder %s169_s26, %s596_s6  ;;  %p605_p11 = scmp.lt.s32.totalorder %s596_s6, %s596_s6 }
  0x1d   : > { %p599_p6 = pnand %p597_p3, %p561_p8  ;;  %p606_p12 = por %p605_p11, %p604_p10 }
  0x1f   : > { %p600_p9 = pneg %p599_p6 }
  0x21   : > { %p607_p13 = pnand %p606_p12, %p600_p9 }
  0x23   : > { %610 = shalt.err (!%p607_p13)
}
  0x24   : > { %513 = dma.hbm_to_vmem [thread:$0]  (!%p748_p7), %s862_s2, 256, %s169_s26, [#allocation5], %s681_s28, %s681_s28, %s682_s29  }
  0x25   : > { %s777_s9 = sadd.s32 1, %s677_s18   ;;  %s25_s10 = sadd.s32 1, %s673_s17 }
  0x26   : > { %s22_s11 = ssub.s32 %s677_s18, %s777_s9  ;;  %p32_p8 = scmp.ne.s32.totalorder %s673_s17, %s669_s16 }
  0x27   : > { %p23_p0 = scmp.eq.s32.totalorder %s22_s11, 0  ;;  %p33_p2 = scmp.eq.s32.totalorder %s677_s18, 0 }
  0x28   : > { %p520_p3 = scmp.lt.s32.totalorder %s677_s18, 2  ;;  %s182_s12 = sand.u32 1, %s673_s17  }
  0x29   : > { %s788_s13 = scalar_select %p23_p0, %s673_s17, %s25_s10  }
  0x2a   : > { %p34_p6 = por %p33_p2, %p32_p8  ;;  %s460_s14 = sshll.u32 %s182_s12, 4 }
  0x2b   : > { %s472_s15 = sshll.u32 %s677_s18, 8  ;;  %s186_s25 = scalar_lea.vmem [#allocation2], %s460_s14 }
  0x2c   : > { %s794_s24 = scalar_lea.hbm %s860_s0, %s472_s15  ;;  %s193_s26 = sshll.u32 %s186_s25, 4  ;;  %s800_s26 = int_to_ptr.vmem [resolvable:$true] %s193_s26 }
  0x2d   : > { %p796_p7 = pnand %p520_p3, %p34_p6  ;;  %s802_s30 = scalar_lea.sflag [#allocation3], %s182_s12 }
  0x2e   : > { %s611_s18 = scalar_lea.hbm %s794_s24, 256  ;;  %s616_s7 = scalar_lea.hbm %s860_s0, 512 }
  0x2f   : > { %p612_p9 = scmp.ne.s32.totalorder %s794_s24, %s611_s18  ;;  %p613_p10 = pneg %p796_p7 }
  0x30   : > { %p617_p13 = scmp.lt.s32.totalorder %s794_s24, %s860_s0  ;;  %p618_p8 = scmp.lt.s32.totalorder %s616_s7, %s611_s18 }
  0x31   : > { %p614_p11 = pnand %p613_p10, %p612_p9 }
  0x32   : > { %p619_p0 = por %p618_p8, %p617_p13 }
  0x33   : > { %p615_p12 = pneg %p614_p11 }
  0x35   : > { %p620_p2 = pnand %p619_p0, %p615_p12 }
  0x37   : > { %623 = shalt.err (!%p620_p2)
}
  0x38   : > { %s624_s11 = scalar_lea.vmem %s800_s26, 256  ;;  %s683_s12 = smov [#allocation2]  }
  0x39   : > { %p625_p3 = scmp.ne.s32.totalorder %s800_s26, %s624_s11  ;;  %s629_s14 = sshll.u32 %s683_s12, 4  ;;  %s630_s14 = int_to_ptr.vmem [resolvable:$false] %s629_s14 }
  0x3a   : > { %s631_s15 = scalar_lea.vmem %s630_s14, 512  ;;  %p632_p11 = scmp.lt.s32.totalorder %s800_s26, %s630_s14 }
  0x3b   : > { %p627_p6 = pnand %p625_p3, %p613_p10  ;;  %p633_p1 = scmp.lt.s32.totalorder %s631_s15, %s624_s11 }
  0x3d   : > { %p628_p9 = pneg %p627_p6  ;;  %p634_p4 = por %p633_p1, %p632_p11 }
  0x3f   : > { %p635_p5 = pnand %p634_p4, %p628_p9 }
  0x41   : > { %638 = shalt.err (!%p635_p5)
}
  0x42   : > { %517 = dma.hbm_to_vmem [thread:$0]  (!%p796_p7), %s794_s24, 256, %s800_s26, %s802_s30, %s681_s28, %s681_s28, %s682_s29  }
  0x43   : > { %p872_p10 = scmp.ne.s32.totalorder %s869_s21, 0 }
  0x44   : > { %s213_s22 = sand.u32 (!%p872_p10), 1, %s669_s16   ;;  %p873_p1 = scmp.ne.s32.totalorder (!%p872_p10), %s868_s20, 0 }
  0x45   : > { %211 = sbr.rel (%p872_p10) target bundleno = 289 (0x121), region = 36  ;;  %s464_s23 = sshll.u32 (!%p872_p10), %s213_s22, 4 }
  0x46   : > { %s214_s25 = scalar_lea.sflag (!%p872_p10), [#allocation3], %s213_s22  ;;  %s217_s18 = scalar_lea.vmem (!%p872_p10), [#allocation2], %s464_s23 }
  0x4a   : > { %656 = dma.done.wait (%p873_p1), %s214_s25, 256  }
  0x4b   : > { %658 = vsyncadd (%p873_p1), %s214_s25, 4294967040  ;;  %p874_p4 = scmp.eq.s32.totalorder %s728_s19, 0 }
  0x4d   : > { %660 = dma.done.wait (%p874_p4), [#allocation5], 1024   ;;  %p875_p5 = pmov %p874_p4 }
  0x4e   : > { %v269_v0 = vld [vmem:[#allocation4 + $0x28] sm:$0xff]  ;;  %v268_v1 = vld [vmem:[#allocation4 + $0x20] sm:$0xff]  ;;  %vm270_vm0 = vcmask 392192   ;;  %v267_v2 = vld [vmem:[#allocation4 + $0x18] sm:$0xff]  ;;  %p254_p7 = scmp.lt.s32.totalorder %s728_s19, 1 }
  0x4f   : > { %662 = vsyncadd (%p875_p5), [#allocation5], 4294966272  ;;  %481 = vmatprep.subr.mxu0 %v269_v0  ;;  %v262_v3 = vld [vmem:[%s217_s18] sm:$0xff]  ;;  %v265_v5 = vld [vmem:[#allocation4 + $0x8] sm:$0xff] }
  0x50   : > { %482 = vmatpush3.msra.mxu0 %v269_v0  ;;  %493 = vmatprep.mubr.msk.f32.mxu0 %vm270_vm0, %v262_v3  ;;  %v266_v4 = vld [vmem:[#allocation4 + $0x10] sm:$0xff]  ;;  %v264_v6 = vld [vmem:[#allocation4] sm:$0xff]  ;;  %v263_v7 = vld [vmem:[%s217_s18 + $0x8] sm:$0xff]  ;;  %s881_s19 = smov (!%p254_p7, %s728_s19), 1 }
  0x51   : > { %483 = vmatprep.subr.mxu0 %v268_v1  ;;  %s496_s20 = smul.u32 24, %s881_s19  ;;  %s256_s29 = scalar_lea.vmem %s863_s3, %s881_s19  ;;  %v353_v9 = vld [vmem:[#allocation6 + $0x8] sm:$0xff]  ;;  %v352_v11 = vld [vmem:[#allocation6] sm:$0xff] }
  0x52   : > { %484 = vmatpush3.msra.mxu0 %v268_v1  ;;  %v358_v8 = vld [vmem:[%s256_s29] sm:$0x1] }
  0x53   : > { %485 = vmatprep.subr.mxu0 %v267_v2  ;;  %s261_s27 = scalar_lea.vmem %s864_s4, %s496_s20 }
  0x54   : > { %486 = vmatpush3.msra.mxu0 %v267_v2  ;;  %359 = vst [vmem:[%s261_s27] sm:$0x1] %v358_v8 }
  0x55   : > { %487 = vmatprep.subr.mxu0 %v266_v4 }
  0x56   : > { %488 = vmatpush3.msra.mxu0 %v266_v4 }
  0x57   : > { %489 = vmatprep.subr.mxu0 %v265_v5 }
  0x58   : > { %490 = vmatpush3.msra.mxu0 %v265_v5 }
  0x59   : > { %491 = vmatprep.subr.mxu0 %v264_v6 }
  0x5a   : > { %492 = vmatpush3.msra.mxu0 %v264_v6 }
  0x5b   : > { %494 = vmatmul.mubr.msk.f32.vlgmr.msra.gmra.mxu0 %vm270_vm0, %v263_v7 }
 0x11b   : > { %v495_v10 = vpop.f32.mrf.mxu0 }
 0x11c   : > { %v355_v12 = vadd.f32 %v495_v10, %v353_v9 }
 0x11d   : > { %v343_v13 = vpop.f32.mrf.mxu0 }
 0x11e   : > { %357 = vst [vmem:[%s261_s27 + $0x9] sm:$0xff] %v355_v12  ;;  %v354_v14 = vadd.f32 %v352_v11, %v343_v13 }
 0x120   : > { %356 = vst [vmem:[%s261_s27 + $0x1] sm:$0xff] %v354_v14 }
 0x121 PF: > { %p15_p12 = scmp.ge.s32.totalorder %s777_s9, 4   ;;  %s876_s15 = smov %s669_s16 }
 0x122   : > { %s877_s16 = smov %s673_s17  ;;  %s878_s17 = smov %s788_s13 }
 0x123   : > { %s879_s18 = smov %s777_s9  ;;  %17 = sbr.rel (!%p15_p12) target bundleno = 4 (0x4), region = 87 }
 0x128   :  { %381 = vsyncpa [#allocation3], 1 }
 0x129   :  { %383 = vsyncpa [#allocation3 + $0x1], 1 }
 0x12a   :  { %384 = vsyncpa [#allocation5], 1 }

</bundles_post_ra>
